<compile_context>
chip_gen: v5e
topology: v5e:2x2
jax: 0.10.0
libtpu: 0.0.40
codegen_flags: <defaults>
</compile_context>

<pallas_src>
import functools

import numpy as np
import jax
import jax.numpy as jnp
from jax import lax
from jax.experimental import pallas as pl
from jax.experimental.pallas import tpu as pltpu


def _round_up(x, m):
    return (x + m - 1) // m * m


# ----------------------------- fused CNN kernel -----------------------------

def _fused_cnn_kernel(cols_ref, w1_ref, b1_ref, w2_ref, b2_ref,
                      wfc_ref, bfc_ref, g_ref, beta_ref, o_ref,
                      *, n_tap2, tap_rows, n_win2, out_dim, pad_n):
    # cols_ref: (1, n_tap2*tap_rows, k1pad) layer-2-ordered im2col of one image.
    cols = cols_ref[0]

    # conv1 (+bias, ReLU): one GEMM.  The /255 scale is pre-folded into w1.
    z1 = jnp.dot(cols, w1_ref[...], preferred_element_type=jnp.float32)
    z1 = jnp.maximum(z1 + b1_ref[...], 0.0)                # (rows, conv_dim)

    # conv2 (+bias, ReLU): accumulate over the k2*k2 taps; tap t's windows are
    # the 16-row-aligned block [t*tap_rows, (t+1)*tap_rows) of z1.
    acc = jnp.zeros((tap_rows, w2_ref.shape[-1]), jnp.float32)
    for t in range(n_tap2):
        acc = acc + jnp.dot(z1[t * tap_rows:(t + 1) * tap_rows, :], w2_ref[t],
                            preferred_element_type=jnp.float32)
    z2 = jnp.maximum(acc + b2_ref[...], 0.0)                # rows >= n_win2: junk, never read

    # fc over the (oh, ow, c) flatten as a sum of per-window matmuls; output
    # width is padded to pad_n (=128) lanes for an unmasked full-width store.
    y = bfc_ref[...]                                         # (1, pad_n)
    for p in range(n_win2):
        y = y + jnp.dot(z2[p:p + 1, :], wfc_ref[p],
                        preferred_element_type=jnp.float32)

    # LayerNorm(eps=1e-5) over the first out_dim lanes only, then tanh.
    # Padded lanes end up exactly 0 (gamma/beta padding is 0).
    lane = lax.broadcasted_iota(jnp.int32, (1, pad_n), 1)
    mask = lane < out_dim
    inv_n = 1.0 / float(out_dim)
    mean = jnp.sum(jnp.where(mask, y, 0.0), axis=-1, keepdims=True) * inv_n
    cen = y - mean
    var = jnp.sum(jnp.where(mask, cen * cen, 0.0), axis=-1, keepdims=True) * inv_n
    yn = cen * lax.rsqrt(var + 1e-5) * g_ref[...] + beta_ref[...]
    o_ref[...] = jnp.tanh(yn)[None]                          # (1, 1, pad_n)


# -------------------------- plan / parameter packing -------------------------

def _make_cnn_plan(in_channels, conv_dim, kernel_sizes, strides, image_size,
                   out_dim):
    assert len(kernel_sizes) == 2 and len(strides) == 2, (
        "fused Pallas CNN is specialized to the 2-conv-layer encoder config")
    k1, k2 = kernel_sizes
    s1, s2 = strides
    oh1 = (image_size - k1) // s1 + 1
    oh2 = (oh1 - k2) // s2 + 1
    assert oh1 >= 1 and oh2 >= 1
    n_tap2 = k2 * k2                      # conv2 taps
    n_win2 = oh2 * oh2                    # conv2 output positions
    tap_rows = _round_up(max(n_win2, 8), 8)   # windows per tap, row-aligned
    feat1 = k1 * k1 * in_channels
    k1pad = _round_up(feat1, 8)           # conv1 contraction dim, aligned
    pad_n = _round_up(max(out_dim, 128), 128)  # lane-dense output width
    rows = n_tap2 * tap_rows

    # Static gather tables: cols[r, f] = image[c, h, w] with r enumerating
    # (kh2, kw2, oh2, ow2) (tap-major, padded) and f enumerating (kh1, kw1, c).
    c_idx = np.zeros((rows, k1pad), np.int32)
    h_idx = np.zeros((rows, k1pad), np.int32)
    w_idx = np.zeros((rows, k1pad), np.int32)
    for kh2 in range(k2):
        for kw2 in range(k2):
            t = kh2 * k2 + kw2
            for oh in range(oh2):
                for ow in range(oh2):
                    r = t * tap_rows + oh * oh2 + ow
                    ih0 = (oh * s2 + kh2) * s1
                    iw0 = (ow * s2 + kw2) * s1
                    f = 0
                    for kh1 in range(k1):
                        for kw1 in range(k1):
                            for c in range(in_channels):
                                c_idx[r, f] = c
                                h_idx[r, f] = ih0 + kh1
                                w_idx[r, f] = iw0 + kw1
                                f += 1
    return dict(k1=k1, k2=k2, s1=s1, s2=s2, oh1=oh1, oh2=oh2,
                n_tap2=n_tap2, n_win2=n_win2, tap_rows=tap_rows,
                feat1=feat1, k1pad=k1pad, pad_n=pad_n, rows=rows,
                conv_dim=conv_dim, out_dim=out_dim, in_channels=in_channels,
                image_size=image_size, c_idx=c_idx, h_idx=h_idx, w_idx=w_idx)


def init_cnn_params(key, in_channels, conv_dim, kernel_sizes, strides,
                    image_size, out_dim):
    plan = _make_cnn_plan(in_channels, conv_dim, kernel_sizes, strides,
                          image_size, out_dim)
    k1, k2 = plan["k1"], plan["k2"]
    ks = key

    ks, kw, kb = jax.random.split(ks, 3)
    bound1 = 1.0 / float(np.sqrt(in_channels * k1 * k1))
    w1 = jax.random.uniform(kw, (k1, k1, in_channels, conv_dim), jnp.float32,
                            -bound1, bound1)
    b1 = jax.random.uniform(kb, (conv_dim,), jnp.float32, -bound1, bound1)
    w1p = jnp.zeros((plan["k1pad"], conv_dim), jnp.float32)
    w1p = w1p.at[:plan["feat1"], :].set(w1.reshape(plan["feat1"], conv_dim))

    ks, kw, kb = jax.random.split(ks, 3)
    bound2 = 1.0 / float(np.sqrt(conv_dim * k2 * k2))
    w2 = jax.random.uniform(kw, (k2, k2, conv_dim, conv_dim), jnp.float32,
                            -bound2, bound2)
    b2 = jax.random.uniform(kb, (conv_dim,), jnp.float32, -bound2, bound2)
    w2p = w2.reshape(plan["n_tap2"], conv_dim, conv_dim)

    flat_dim = plan["n_win2"] * conv_dim
    ks, kw, kb = jax.random.split(ks, 3)
    boundf = 1.0 / float(np.sqrt(flat_dim))
    fc_w = jax.random.uniform(kw, (flat_dim, out_dim), jnp.float32,
                              -boundf, boundf)
    fc_b = jax.random.uniform(kb, (out_dim,), jnp.float32, -boundf, boundf)
    wfcp = jnp.zeros((plan["n_win2"], conv_dim, plan["pad_n"]), jnp.float32)
    wfcp = wfcp.at[:, :, :out_dim].set(
        fc_w.reshape(plan["n_win2"], conv_dim, out_dim))
    bfcp = jnp.zeros((1, plan["pad_n"]), jnp.float32).at[0, :out_dim].set(fc_b)
    gamma = jnp.zeros((1, plan["pad_n"]), jnp.float32).at[0, :out_dim].set(1.0)
    beta = jnp.zeros((1, plan["pad_n"]), jnp.float32)

    return {"plan": plan,
            "w1": w1p, "b1": b1.reshape(1, conv_dim),
            "w2": w2p, "b2": b2.reshape(1, conv_dim),
            "wfc": wfcp, "bfc": bfcp, "ln_g": gamma, "ln_b": beta}


# ------------------------------ forward wrappers -----------------------------

def cnn_forward(v_nchw, params):
    """CNN.forward: convs+ReLU -> flatten -> fc -> LayerNorm -> tanh (fused)."""
    plan = params["plan"]
    v = v_nchw.astype(jnp.float32)
    B = v.shape[0]

    # PyTorch: `if v.max() > 1.0: v = v / 255.0`.  Conv is linear in its input,
    # so the data-dependent scale is folded into the conv1 weights instead of
    # touching the image in HBM.
    scale = jnp.where(jnp.max(v) > 1.0, 1.0 / 255.0, 1.0).astype(jnp.float32)
    w1 = params["w1"] * scale

    # Layer-2-ordered im2col of the raw NCHW image: one small static gather
    # that also does the channels-last reorder and both stride-2 subsamplings.
    cols = v[:, plan["c_idx"], plan["h_idx"], plan["w_idx"]]  # (B, rows, k1pad)

    kern = functools.partial(
        _fused_cnn_kernel,
        n_tap2=plan["n_tap2"], tap_rows=plan["tap_rows"],
        n_win2=plan["n_win2"], out_dim=plan["out_dim"], pad_n=plan["pad_n"])

    out = pl.pallas_call(
        kern,
        out_shape=jax.ShapeDtypeStruct((B, 1, plan["pad_n"]), jnp.float32),
        grid=(B,),
        in_specs=[
            pl.BlockSpec((1, plan["rows"], plan["k1pad"]), lambda b: (b, 0, 0)),
            pl.BlockSpec(params["w1"].shape, lambda b: (0, 0)),
            pl.BlockSpec(params["b1"].shape, lambda b: (0, 0)),
            pl.BlockSpec(params["w2"].shape, lambda b: (0, 0, 0)),
            pl.BlockSpec(params["b2"].shape, lambda b: (0, 0)),
            pl.BlockSpec(params["wfc"].shape, lambda b: (0, 0, 0)),
            pl.BlockSpec(params["bfc"].shape, lambda b: (0, 0)),
            pl.BlockSpec(params["ln_g"].shape, lambda b: (0, 0)),
            pl.BlockSpec(params["ln_b"].shape, lambda b: (0, 0)),
        ],
        out_specs=pl.BlockSpec((1, 1, plan["pad_n"]), lambda b: (b, 0, 0)),
        compiler_params=pltpu.CompilerParams(
            dimension_semantics=("parallel",)),  # both TCs get work on v7x
    )(cols, w1, params["b1"], params["w2"], params["b2"],
      params["wfc"], params["bfc"], params["ln_g"], params["ln_b"])

    return out.reshape(B, plan["pad_n"])[:, :plan["out_dim"]]


def encoder_forward(ob, params, ob_space_meta):
    """Encoder.forward: per-key encode, then concat along last dim."""
    outs = []
    for key, meta in ob_space_meta.items():
        v = ob[key]
        if meta["type"] == "image":
            outs.append(cnn_forward(v, params[key]))
        else:  # 1-D observation -> flatten (self.base[k] is None)
            outs.append(v.reshape(v.shape[0], -1).astype(jnp.float32))
    out = jnp.concatenate(outs, axis=-1)
    assert out.ndim == 2
    return out


# ------------------------------------ driver ---------------------------------

if __name__ == "__main__":
    key = jax.random.PRNGKey(0)
    k_img, k_state, k_param = jax.random.split(key, 3)

    B = 2
    C, H, W = 3, 16, 16          # image ob shape (C, H, W), PyTorch NCHW batch
    STATE_DIM = 7                # 1-D ob
    CONV_DIM = 8
    KERNELS = (3, 3)
    STRIDES = (2, 2)
    OUT_DIM = 32                 # CNN output_dim (config.encoder_conv_output_dim)

    # Observation dict (same iteration order as ob_space / ob in the module).
    ob = {
        "camera_ob": jax.random.uniform(k_img, (B, C, H, W), jnp.float32,
                                        0.0, 255.0),
        "robot_ob": jax.random.normal(k_state, (B, STATE_DIM), jnp.float32),
    }
    ob_space_meta = {
        "camera_ob": {"type": "image"},
        "robot_ob": {"type": "vector"},
    }
    params = {
        "camera_ob": init_cnn_params(k_param, C, CONV_DIM, KERNELS, STRIDES,
                                     H, OUT_DIM),
    }

    out = encoder_forward(ob, params, ob_space_meta)
    out = jax.block_until_ready(out)

    # 16 -> conv(3,s2) -> 7 -> conv(3,s2) -> 3 ; CNN out = 32 ; + state 7 = 39
    assert out.shape == (B, OUT_DIM + STATE_DIM), out.shape
    assert bool(jnp.all(jnp.isfinite(out)))
    assert bool(jnp.all(out[:, :OUT_DIM] >= -1.0)) and bool(
        jnp.all(out[:, :OUT_DIM] <= 1.0))
    print("KERNEL_OK")
</pallas_src>

<mosaic_0001>
module attributes {stable_mosaic.version = 11 : i64} {
  func.func @_fused_cnn_kernel(%arg0: i32, %arg1: memref<1x144x32xf32, #tpu.memory_space<vmem>>, %arg2: memref<32x8xf32, #tpu.memory_space<vmem>>, %arg3: memref<1x8xf32, #tpu.memory_space<vmem>>, %arg4: memref<9x8x8xf32, #tpu.memory_space<vmem>>, %arg5: memref<1x8xf32, #tpu.memory_space<vmem>>, %arg6: memref<9x8x128xf32, #tpu.memory_space<vmem>>, %arg7: memref<1x128xf32, #tpu.memory_space<vmem>>, %arg8: memref<1x128xf32, #tpu.memory_space<vmem>>, %arg9: memref<1x128xf32, #tpu.memory_space<vmem>>, %arg10: memref<1x1x128xf32, #tpu.memory_space<vmem>>) attributes {dimension_semantics = [#tpu.dimension_semantics<parallel>], iteration_bounds = array<i64: 2>, scalar_prefetch = 0 : i64, scratch_operands = 0 : i64, tpu.core_type = #tpu.core_type<tc>, window_params = [{transform_indices = @transform_0, window_bounds = array<i64: 1, 144, 32>}, {pipeline_mode = #tpu.pipeline_mode<synchronous>, transform_indices = @transform_1, window_bounds = array<i64: 32, 8>}, {pipeline_mode = #tpu.pipeline_mode<synchronous>, transform_indices = @transform_2, window_bounds = array<i64: 1, 8>}, {pipeline_mode = #tpu.pipeline_mode<synchronous>, transform_indices = @transform_3, window_bounds = array<i64: 9, 8, 8>}, {pipeline_mode = #tpu.pipeline_mode<synchronous>, transform_indices = @transform_4, window_bounds = array<i64: 1, 8>}, {pipeline_mode = #tpu.pipeline_mode<synchronous>, transform_indices = @transform_5, window_bounds = array<i64: 9, 8, 128>}, {pipeline_mode = #tpu.pipeline_mode<synchronous>, transform_indices = @transform_6, window_bounds = array<i64: 1, 128>}, {pipeline_mode = #tpu.pipeline_mode<synchronous>, transform_indices = @transform_7, window_bounds = array<i64: 1, 128>}, {pipeline_mode = #tpu.pipeline_mode<synchronous>, transform_indices = @transform_8, window_bounds = array<i64: 1, 128>}, {transform_indices = @transform_9, window_bounds = array<i64: 1, 1, 128>}]} {
    %c0 = arith.constant 0 : index
    %c0_0 = arith.constant 0 : index
    %c0_1 = arith.constant 0 : index
    %0 = vector.load %arg1[%c0, %c0_0, %c0_1] : memref<1x144x32xf32, #tpu.memory_space<vmem>>, vector<1x144x32xf32>
    %1 = vector.shape_cast %0 : vector<1x144x32xf32> to vector<144x32xf32>
    %c0_2 = arith.constant 0 : index
    %c0_3 = arith.constant 0 : index
    %2 = vector.load %arg2[%c0_2, %c0_3] : memref<32x8xf32, #tpu.memory_space<vmem>>, vector<32x8xf32>
    %cst = arith.constant dense<0.000000e+00> : vector<144x8xf32>
    %3 = tpu.matmul %1, %2, %cst {dimension_numbers = #tpu.dot_dimension_numbers<[1], [0], [0], [1], [0, 0, 1, 1], [], []>} : vector<144x32xf32>, vector<32x8xf32>, vector<144x8xf32> -> vector<144x8xf32>
    %c0_4 = arith.constant 0 : index
    %c0_5 = arith.constant 0 : index
    %4 = vector.load %arg3[%c0_4, %c0_5] : memref<1x8xf32, #tpu.memory_space<vmem>>, vector<1x8xf32>
    %5 = vector.broadcast %4 : vector<1x8xf32> to vector<144x8xf32>
    %6 = arith.addf %3, %5 : vector<144x8xf32>
    %cst_6 = arith.constant 0.000000e+00 : f32
    %7 = vector.broadcast %cst_6 : f32 to vector<144x8xf32>
    %8 = arith.maximumf %6, %7 : vector<144x8xf32>
    %cst_7 = arith.constant 0.000000e+00 : f32
    %9 = vector.broadcast %cst_7 : f32 to vector<16x8xf32>
    %10 = vector.extract_strided_slice %8 {offsets = [0, 0], sizes = [16, 8], strides = [1, 1]} : vector<144x8xf32> to vector<16x8xf32>
    %c0_8 = arith.constant 0 : index
    %c0_9 = arith.constant 0 : index
    %c0_10 = arith.constant 0 : index
    %11 = vector.load %arg4[%c0_8, %c0_9, %c0_10] : memref<9x8x8xf32, #tpu.memory_space<vmem>>, vector<1x8x8xf32>
    %12 = vector.shape_cast %11 : vector<1x8x8xf32> to vector<8x8xf32>
    %cst_11 = arith.constant dense<0.000000e+00> : vector<16x8xf32>
    %13 = tpu.matmul %10, %12, %cst_11 {dimension_numbers = #tpu.dot_dimension_numbers<[1], [0], [0], [1], [0, 0, 1, 1], [], []>} : vector<16x8xf32>, vector<8x8xf32>, vector<16x8xf32> -> vector<16x8xf32>
    %14 = arith.addf %9, %13 : vector<16x8xf32>
    %15 = vector.extract_strided_slice %8 {offsets = [16, 0], sizes = [16, 8], strides = [1, 1]} : vector<144x8xf32> to vector<16x8xf32>
    %c1 = arith.constant 1 : index
    %c0_12 = arith.constant 0 : index
    %c0_13 = arith.constant 0 : index
    %16 = vector.load %arg4[%c1, %c0_12, %c0_13] : memref<9x8x8xf32, #tpu.memory_space<vmem>>, vector<1x8x8xf32>
    %17 = vector.shape_cast %16 : vector<1x8x8xf32> to vector<8x8xf32>
    %cst_14 = arith.constant dense<0.000000e+00> : vector<16x8xf32>
    %18 = tpu.matmul %15, %17, %cst_14 {dimension_numbers = #tpu.dot_dimension_numbers<[1], [0], [0], [1], [0, 0, 1, 1], [], []>} : vector<16x8xf32>, vector<8x8xf32>, vector<16x8xf32> -> vector<16x8xf32>
    %19 = arith.addf %14, %18 : vector<16x8xf32>
    %20 = vector.extract_strided_slice %8 {offsets = [32, 0], sizes = [16, 8], strides = [1, 1]} : vector<144x8xf32> to vector<16x8xf32>
    %c2 = arith.constant 2 : index
    %c0_15 = arith.constant 0 : index
    %c0_16 = arith.constant 0 : index
    %21 = vector.load %arg4[%c2, %c0_15, %c0_16] : memref<9x8x8xf32, #tpu.memory_space<vmem>>, vector<1x8x8xf32>
    %22 = vector.shape_cast %21 : vector<1x8x8xf32> to vector<8x8xf32>
    %cst_17 = arith.constant dense<0.000000e+00> : vector<16x8xf32>
    %23 = tpu.matmul %20, %22, %cst_17 {dimension_numbers = #tpu.dot_dimension_numbers<[1], [0], [0], [1], [0, 0, 1, 1], [], []>} : vector<16x8xf32>, vector<8x8xf32>, vector<16x8xf32> -> vector<16x8xf32>
    %24 = arith.addf %19, %23 : vector<16x8xf32>
    %25 = vector.extract_strided_slice %8 {offsets = [48, 0], sizes = [16, 8], strides = [1, 1]} : vector<144x8xf32> to vector<16x8xf32>
    %c3 = arith.constant 3 : index
    %c0_18 = arith.constant 0 : index
    %c0_19 = arith.constant 0 : index
    %26 = vector.load %arg4[%c3, %c0_18, %c0_19] : memref<9x8x8xf32, #tpu.memory_space<vmem>>, vector<1x8x8xf32>
    %27 = vector.shape_cast %26 : vector<1x8x8xf32> to vector<8x8xf32>
    %cst_20 = arith.constant dense<0.000000e+00> : vector<16x8xf32>
    %28 = tpu.matmul %25, %27, %cst_20 {dimension_numbers = #tpu.dot_dimension_numbers<[1], [0], [0], [1], [0, 0, 1, 1], [], []>} : vector<16x8xf32>, vector<8x8xf32>, vector<16x8xf32> -> vector<16x8xf32>
    %29 = arith.addf %24, %28 : vector<16x8xf32>
    %30 = vector.extract_strided_slice %8 {offsets = [64, 0], sizes = [16, 8], strides = [1, 1]} : vector<144x8xf32> to vector<16x8xf32>
    %c4 = arith.constant 4 : index
    %c0_21 = arith.constant 0 : index
    %c0_22 = arith.constant 0 : index
    %31 = vector.load %arg4[%c4, %c0_21, %c0_22] : memref<9x8x8xf32, #tpu.memory_space<vmem>>, vector<1x8x8xf32>
    %32 = vector.shape_cast %31 : vector<1x8x8xf32> to vector<8x8xf32>
    %cst_23 = arith.constant dense<0.000000e+00> : vector<16x8xf32>
    %33 = tpu.matmul %30, %32, %cst_23 {dimension_numbers = #tpu.dot_dimension_numbers<[1], [0], [0], [1], [0, 0, 1, 1], [], []>} : vector<16x8xf32>, vector<8x8xf32>, vector<16x8xf32> -> vector<16x8xf32>
    %34 = arith.addf %29, %33 : vector<16x8xf32>
    %35 = vector.extract_strided_slice %8 {offsets = [80, 0], sizes = [16, 8], strides = [1, 1]} : vector<144x8xf32> to vector<16x8xf32>
    %c5 = arith.constant 5 : index
    %c0_24 = arith.constant 0 : index
    %c0_25 = arith.constant 0 : index
    %36 = vector.load %arg4[%c5, %c0_24, %c0_25] : memref<9x8x8xf32, #tpu.memory_space<vmem>>, vector<1x8x8xf32>
    %37 = vector.shape_cast %36 : vector<1x8x8xf32> to vector<8x8xf32>
    %cst_26 = arith.constant dense<0.000000e+00> : vector<16x8xf32>
    %38 = tpu.matmul %35, %37, %cst_26 {dimension_numbers = #tpu.dot_dimension_numbers<[1], [0], [0], [1], [0, 0, 1, 1], [], []>} : vector<16x8xf32>, vector<8x8xf32>, vector<16x8xf32> -> vector<16x8xf32>
    %39 = arith.addf %34, %38 : vector<16x8xf32>
    %40 = vector.extract_strided_slice %8 {offsets = [96, 0], sizes = [16, 8], strides = [1, 1]} : vector<144x8xf32> to vector<16x8xf32>
    %c6 = arith.constant 6 : index
    %c0_27 = arith.constant 0 : index
    %c0_28 = arith.constant 0 : index
    %41 = vector.load %arg4[%c6, %c0_27, %c0_28] : memref<9x8x8xf32, #tpu.memory_space<vmem>>, vector<1x8x8xf32>
    %42 = vector.shape_cast %41 : vector<1x8x8xf32> to vector<8x8xf32>
    %cst_29 = arith.constant dense<0.000000e+00> : vector<16x8xf32>
    %43 = tpu.matmul %40, %42, %cst_29 {dimension_numbers = #tpu.dot_dimension_numbers<[1], [0], [0], [1], [0, 0, 1, 1], [], []>} : vector<16x8xf32>, vector<8x8xf32>, vector<16x8xf32> -> vector<16x8xf32>
    %44 = arith.addf %39, %43 : vector<16x8xf32>
    %45 = vector.extract_strided_slice %8 {offsets = [112, 0], sizes = [16, 8], strides = [1, 1]} : vector<144x8xf32> to vector<16x8xf32>
    %c7 = arith.constant 7 : index
    %c0_30 = arith.constant 0 : index
    %c0_31 = arith.constant 0 : index
    %46 = vector.load %arg4[%c7, %c0_30, %c0_31] : memref<9x8x8xf32, #tpu.memory_space<vmem>>, vector<1x8x8xf32>
    %47 = vector.shape_cast %46 : vector<1x8x8xf32> to vector<8x8xf32>
    %cst_32 = arith.constant dense<0.000000e+00> : vector<16x8xf32>
    %48 = tpu.matmul %45, %47, %cst_32 {dimension_numbers = #tpu.dot_dimension_numbers<[1], [0], [0], [1], [0, 0, 1, 1], [], []>} : vector<16x8xf32>, vector<8x8xf32>, vector<16x8xf32> -> vector<16x8xf32>
    %49 = arith.addf %44, %48 : vector<16x8xf32>
    %50 = vector.extract_strided_slice %8 {offsets = [128, 0], sizes = [16, 8], strides = [1, 1]} : vector<144x8xf32> to vector<16x8xf32>
    %c8 = arith.constant 8 : index
    %c0_33 = arith.constant 0 : index
    %c0_34 = arith.constant 0 : index
    %51 = vector.load %arg4[%c8, %c0_33, %c0_34] : memref<9x8x8xf32, #tpu.memory_space<vmem>>, vector<1x8x8xf32>
    %52 = vector.shape_cast %51 : vector<1x8x8xf32> to vector<8x8xf32>
    %cst_35 = arith.constant dense<0.000000e+00> : vector<16x8xf32>
    %53 = tpu.matmul %50, %52, %cst_35 {dimension_numbers = #tpu.dot_dimension_numbers<[1], [0], [0], [1], [0, 0, 1, 1], [], []>} : vector<16x8xf32>, vector<8x8xf32>, vector<16x8xf32> -> vector<16x8xf32>
    %54 = arith.addf %49, %53 : vector<16x8xf32>
    %c0_36 = arith.constant 0 : index
    %c0_37 = arith.constant 0 : index
    %55 = vector.load %arg5[%c0_36, %c0_37] : memref<1x8xf32, #tpu.memory_space<vmem>>, vector<1x8xf32>
    %56 = vector.broadcast %55 : vector<1x8xf32> to vector<16x8xf32>
    %57 = arith.addf %54, %56 : vector<16x8xf32>
    %cst_38 = arith.constant 0.000000e+00 : f32
    %58 = vector.broadcast %cst_38 : f32 to vector<16x8xf32>
    %59 = arith.maximumf %57, %58 : vector<16x8xf32>
    %c0_39 = arith.constant 0 : index
    %c0_40 = arith.constant 0 : index
    %60 = vector.load %arg7[%c0_39, %c0_40] : memref<1x128xf32, #tpu.memory_space<vmem>>, vector<1x128xf32>
    %61 = vector.extract_strided_slice %59 {offsets = [0, 0], sizes = [1, 8], strides = [1, 1]} : vector<16x8xf32> to vector<1x8xf32>
    %c0_41 = arith.constant 0 : index
    %c0_42 = arith.constant 0 : index
    %c0_43 = arith.constant 0 : index
    %62 = vector.load %arg6[%c0_41, %c0_42, %c0_43] : memref<9x8x128xf32, #tpu.memory_space<vmem>>, vector<1x8x128xf32>
    %63 = vector.shape_cast %62 : vector<1x8x128xf32> to vector<8x128xf32>
    %cst_44 = arith.constant dense<0.000000e+00> : vector<1x128xf32>
    %64 = tpu.matmul %61, %63, %cst_44 {dimension_numbers = #tpu.dot_dimension_numbers<[1], [0], [0], [1], [0, 0, 1, 1], [], []>} : vector<1x8xf32>, vector<8x128xf32>, vector<1x128xf32> -> vector<1x128xf32>
    %65 = arith.addf %60, %64 : vector<1x128xf32>
    %66 = vector.extract_strided_slice %59 {offsets = [1, 0], sizes = [1, 8], strides = [1, 1]} : vector<16x8xf32> to vector<1x8xf32>
    %c1_45 = arith.constant 1 : index
    %c0_46 = arith.constant 0 : index
    %c0_47 = arith.constant 0 : index
    %67 = vector.load %arg6[%c1_45, %c0_46, %c0_47] : memref<9x8x128xf32, #tpu.memory_space<vmem>>, vector<1x8x128xf32>
    %68 = vector.shape_cast %67 : vector<1x8x128xf32> to vector<8x128xf32>
    %cst_48 = arith.constant dense<0.000000e+00> : vector<1x128xf32>
    %69 = tpu.matmul %66, %68, %cst_48 {dimension_numbers = #tpu.dot_dimension_numbers<[1], [0], [0], [1], [0, 0, 1, 1], [], []>} : vector<1x8xf32>, vector<8x128xf32>, vector<1x128xf32> -> vector<1x128xf32>
    %70 = arith.addf %65, %69 : vector<1x128xf32>
    %71 = vector.extract_strided_slice %59 {offsets = [2, 0], sizes = [1, 8], strides = [1, 1]} : vector<16x8xf32> to vector<1x8xf32>
    %c2_49 = arith.constant 2 : index
    %c0_50 = arith.constant 0 : index
    %c0_51 = arith.constant 0 : index
    %72 = vector.load %arg6[%c2_49, %c0_50, %c0_51] : memref<9x8x128xf32, #tpu.memory_space<vmem>>, vector<1x8x128xf32>
    %73 = vector.shape_cast %72 : vector<1x8x128xf32> to vector<8x128xf32>
    %cst_52 = arith.constant dense<0.000000e+00> : vector<1x128xf32>
    %74 = tpu.matmul %71, %73, %cst_52 {dimension_numbers = #tpu.dot_dimension_numbers<[1], [0], [0], [1], [0, 0, 1, 1], [], []>} : vector<1x8xf32>, vector<8x128xf32>, vector<1x128xf32> -> vector<1x128xf32>
    %75 = arith.addf %70, %74 : vector<1x128xf32>
    %76 = vector.extract_strided_slice %59 {offsets = [3, 0], sizes = [1, 8], strides = [1, 1]} : vector<16x8xf32> to vector<1x8xf32>
    %c3_53 = arith.constant 3 : index
    %c0_54 = arith.constant 0 : index
    %c0_55 = arith.constant 0 : index
    %77 = vector.load %arg6[%c3_53, %c0_54, %c0_55] : memref<9x8x128xf32, #tpu.memory_space<vmem>>, vector<1x8x128xf32>
    %78 = vector.shape_cast %77 : vector<1x8x128xf32> to vector<8x128xf32>
    %cst_56 = arith.constant dense<0.000000e+00> : vector<1x128xf32>
    %79 = tpu.matmul %76, %78, %cst_56 {dimension_numbers = #tpu.dot_dimension_numbers<[1], [0], [0], [1], [0, 0, 1, 1], [], []>} : vector<1x8xf32>, vector<8x128xf32>, vector<1x128xf32> -> vector<1x128xf32>
    %80 = arith.addf %75, %79 : vector<1x128xf32>
    %81 = vector.extract_strided_slice %59 {offsets = [4, 0], sizes = [1, 8], strides = [1, 1]} : vector<16x8xf32> to vector<1x8xf32>
    %c4_57 = arith.constant 4 : index
    %c0_58 = arith.constant 0 : index
    %c0_59 = arith.constant 0 : index
    %82 = vector.load %arg6[%c4_57, %c0_58, %c0_59] : memref<9x8x128xf32, #tpu.memory_space<vmem>>, vector<1x8x128xf32>
    %83 = vector.shape_cast %82 : vector<1x8x128xf32> to vector<8x128xf32>
    %cst_60 = arith.constant dense<0.000000e+00> : vector<1x128xf32>
    %84 = tpu.matmul %81, %83, %cst_60 {dimension_numbers = #tpu.dot_dimension_numbers<[1], [0], [0], [1], [0, 0, 1, 1], [], []>} : vector<1x8xf32>, vector<8x128xf32>, vector<1x128xf32> -> vector<1x128xf32>
    %85 = arith.addf %80, %84 : vector<1x128xf32>
    %86 = vector.extract_strided_slice %59 {offsets = [5, 0], sizes = [1, 8], strides = [1, 1]} : vector<16x8xf32> to vector<1x8xf32>
    %c5_61 = arith.constant 5 : index
    %c0_62 = arith.constant 0 : index
    %c0_63 = arith.constant 0 : index
    %87 = vector.load %arg6[%c5_61, %c0_62, %c0_63] : memref<9x8x128xf32, #tpu.memory_space<vmem>>, vector<1x8x128xf32>
    %88 = vector.shape_cast %87 : vector<1x8x128xf32> to vector<8x128xf32>
    %cst_64 = arith.constant dense<0.000000e+00> : vector<1x128xf32>
    %89 = tpu.matmul %86, %88, %cst_64 {dimension_numbers = #tpu.dot_dimension_numbers<[1], [0], [0], [1], [0, 0, 1, 1], [], []>} : vector<1x8xf32>, vector<8x128xf32>, vector<1x128xf32> -> vector<1x128xf32>
    %90 = arith.addf %85, %89 : vector<1x128xf32>
    %91 = vector.extract_strided_slice %59 {offsets = [6, 0], sizes = [1, 8], strides = [1, 1]} : vector<16x8xf32> to vector<1x8xf32>
    %c6_65 = arith.constant 6 : index
    %c0_66 = arith.constant 0 : index
    %c0_67 = arith.constant 0 : index
    %92 = vector.load %arg6[%c6_65, %c0_66, %c0_67] : memref<9x8x128xf32, #tpu.memory_space<vmem>>, vector<1x8x128xf32>
    %93 = vector.shape_cast %92 : vector<1x8x128xf32> to vector<8x128xf32>
    %cst_68 = arith.constant dense<0.000000e+00> : vector<1x128xf32>
    %94 = tpu.matmul %91, %93, %cst_68 {dimension_numbers = #tpu.dot_dimension_numbers<[1], [0], [0], [1], [0, 0, 1, 1], [], []>} : vector<1x8xf32>, vector<8x128xf32>, vector<1x128xf32> -> vector<1x128xf32>
    %95 = arith.addf %90, %94 : vector<1x128xf32>
    %96 = vector.extract_strided_slice %59 {offsets = [7, 0], sizes = [1, 8], strides = [1, 1]} : vector<16x8xf32> to vector<1x8xf32>
    %c7_69 = arith.constant 7 : index
    %c0_70 = arith.constant 0 : index
    %c0_71 = arith.constant 0 : index
    %97 = vector.load %arg6[%c7_69, %c0_70, %c0_71] : memref<9x8x128xf32, #tpu.memory_space<vmem>>, vector<1x8x128xf32>
    %98 = vector.shape_cast %97 : vector<1x8x128xf32> to vector<8x128xf32>
    %cst_72 = arith.constant dense<0.000000e+00> : vector<1x128xf32>
    %99 = tpu.matmul %96, %98, %cst_72 {dimension_numbers = #tpu.dot_dimension_numbers<[1], [0], [0], [1], [0, 0, 1, 1], [], []>} : vector<1x8xf32>, vector<8x128xf32>, vector<1x128xf32> -> vector<1x128xf32>
    %100 = arith.addf %95, %99 : vector<1x128xf32>
    %101 = vector.extract_strided_slice %59 {offsets = [8, 0], sizes = [1, 8], strides = [1, 1]} : vector<16x8xf32> to vector<1x8xf32>
    %c8_73 = arith.constant 8 : index
    %c0_74 = arith.constant 0 : index
    %c0_75 = arith.constant 0 : index
    %102 = vector.load %arg6[%c8_73, %c0_74, %c0_75] : memref<9x8x128xf32, #tpu.memory_space<vmem>>, vector<1x8x128xf32>
    %103 = vector.shape_cast %102 : vector<1x8x128xf32> to vector<8x128xf32>
    %cst_76 = arith.constant dense<0.000000e+00> : vector<1x128xf32>
    %104 = tpu.matmul %101, %103, %cst_76 {dimension_numbers = #tpu.dot_dimension_numbers<[1], [0], [0], [1], [0, 0, 1, 1], [], []>} : vector<1x8xf32>, vector<8x128xf32>, vector<1x128xf32> -> vector<1x128xf32>
    %105 = arith.addf %100, %104 : vector<1x128xf32>
    %106 = tpu.iota {dimensions = array<i32: 1>} : vector<1x128xi32>
    %c32_i32 = arith.constant 32 : i32
    %107 = vector.broadcast %c32_i32 : i32 to vector<1x128xi32>
    %108 = arith.cmpi slt, %106, %107 : vector<1x128xi32>
    %cst_77 = arith.constant 0.000000e+00 : f32
    %109 = vector.broadcast %cst_77 : f32 to vector<1x128xf32>
    %110 = arith.select %108, %105, %109 : vector<1x128xi1>, vector<1x128xf32>
    %cst_78 = arith.constant dense<0.000000e+00> : vector<1xf32>
    %111 = vector.multi_reduction <add>, %110, %cst_78 [1] : vector<1x128xf32> to vector<1xf32>
    %112 = vector.shape_cast %111 : vector<1xf32> to vector<1x1xf32>
    %cst_79 = arith.constant 3.125000e-02 : f32
    %113 = vector.broadcast %cst_79 : f32 to vector<1x1xf32>
    %114 = arith.mulf %112, %113 : vector<1x1xf32>
    %115 = vector.broadcast %114 : vector<1x1xf32> to vector<1x128xf32>
    %116 = arith.subf %105, %115 : vector<1x128xf32>
    %117 = arith.mulf %116, %116 : vector<1x128xf32>
    %cst_80 = arith.constant 0.000000e+00 : f32
    %118 = vector.broadcast %cst_80 : f32 to vector<1x128xf32>
    %119 = arith.select %108, %117, %118 : vector<1x128xi1>, vector<1x128xf32>
    %cst_81 = arith.constant dense<0.000000e+00> : vector<1xf32>
    %120 = vector.multi_reduction <add>, %119, %cst_81 [1] : vector<1x128xf32> to vector<1xf32>
    %121 = vector.shape_cast %120 : vector<1xf32> to vector<1x1xf32>
    %cst_82 = arith.constant 3.125000e-02 : f32
    %122 = vector.broadcast %cst_82 : f32 to vector<1x1xf32>
    %123 = arith.mulf %121, %122 : vector<1x1xf32>
    %cst_83 = arith.constant 9.99999974E-6 : f32
    %124 = vector.broadcast %cst_83 : f32 to vector<1x1xf32>
    %125 = arith.addf %123, %124 : vector<1x1xf32>
    %126 = math.rsqrt %125 : vector<1x1xf32>
    %127 = vector.broadcast %126 : vector<1x1xf32> to vector<1x128xf32>
    %128 = arith.mulf %116, %127 : vector<1x128xf32>
    %c0_84 = arith.constant 0 : index
    %c0_85 = arith.constant 0 : index
    %129 = vector.load %arg8[%c0_84, %c0_85] : memref<1x128xf32, #tpu.memory_space<vmem>>, vector<1x128xf32>
    %130 = arith.mulf %128, %129 : vector<1x128xf32>
    %c0_86 = arith.constant 0 : index
    %c0_87 = arith.constant 0 : index
    %131 = vector.load %arg9[%c0_86, %c0_87] : memref<1x128xf32, #tpu.memory_space<vmem>>, vector<1x128xf32>
    %132 = arith.addf %130, %131 : vector<1x128xf32>
    %133 = math.tanh %132 : vector<1x128xf32>
    %134 = vector.shape_cast %133 : vector<1x128xf32> to vector<1x1x128xf32>
    %c0_88 = arith.constant 0 : index
    %c0_89 = arith.constant 0 : index
    %c0_90 = arith.constant 0 : index
    %135 = vector.load %arg10[%c0_88, %c0_89, %c0_90] : memref<1x1x128xf32, #tpu.memory_space<vmem>>, vector<1x1x128xf32>
    tpu.vector_store %arg10[%c0_88, %c0_89, %c0_90], %134 {strides = array<i32>} : memref<1x1x128xf32, #tpu.memory_space<vmem>>, vector<1x1x128xf32>,
    return
  }
  func.func @transform_0(%arg0: i32) -> (i32, i32, i32) {
    %c0_i32 = arith.constant 0 : i32
    %c0_i32_0 = arith.constant 0 : i32
    %c0_i32_1 = arith.constant 0 : i32
    return %arg0, %c0_i32, %c0_i32_0 : i32, i32, i32
  }
  func.func @transform_1(%arg0: i32) -> (i32, i32) {
    %c0_i32 = arith.constant 0 : i32
    %c0_i32_0 = arith.constant 0 : i32
    %c0_i32_1 = arith.constant 0 : i32
    return %c0_i32, %c0_i32_0 : i32, i32
  }
  func.func @transform_2(%arg0: i32) -> (i32, i32) {
    %c0_i32 = arith.constant 0 : i32
    %c0_i32_0 = arith.constant 0 : i32
    %c0_i32_1 = arith.constant 0 : i32
    return %c0_i32, %c0_i32_0 : i32, i32
  }
  func.func @transform_3(%arg0: i32) -> (i32, i32, i32) {
    %c0_i32 = arith.constant 0 : i32
    %c0_i32_0 = arith.constant 0 : i32
    %c0_i32_1 = arith.constant 0 : i32
    %c0_i32_2 = arith.constant 0 : i32
    return %c0_i32, %c0_i32_0, %c0_i32_1 : i32, i32, i32
  }
  func.func @transform_4(%arg0: i32) -> (i32, i32) {
    %c0_i32 = arith.constant 0 : i32
    %c0_i32_0 = arith.constant 0 : i32
    %c0_i32_1 = arith.constant 0 : i32
    return %c0_i32, %c0_i32_0 : i32, i32
  }
  func.func @transform_5(%arg0: i32) -> (i32, i32, i32) {
    %c0_i32 = arith.constant 0 : i32
    %c0_i32_0 = arith.constant 0 : i32
    %c0_i32_1 = arith.constant 0 : i32
    %c0_i32_2 = arith.constant 0 : i32
    return %c0_i32, %c0_i32_0, %c0_i32_1 : i32, i32, i32
  }
  func.func @transform_6(%arg0: i32) -> (i32, i32) {
    %c0_i32 = arith.constant 0 : i32
    %c0_i32_0 = arith.constant 0 : i32
    %c0_i32_1 = arith.constant 0 : i32
    return %c0_i32, %c0_i32_0 : i32, i32
  }
  func.func @transform_7(%arg0: i32) -> (i32, i32) {
    %c0_i32 = arith.constant 0 : i32
    %c0_i32_0 = arith.constant 0 : i32
    %c0_i32_1 = arith.constant 0 : i32
    return %c0_i32, %c0_i32_0 : i32, i32
  }
  func.func @transform_8(%arg0: i32) -> (i32, i32) {
    %c0_i32 = arith.constant 0 : i32
    %c0_i32_0 = arith.constant 0 : i32
    %c0_i32_1 = arith.constant 0 : i32
    return %c0_i32, %c0_i32_0 : i32, i32
  }
  func.func @transform_9(%arg0: i32) -> (i32, i32, i32) {
    %c0_i32 = arith.constant 0 : i32
    %c0_i32_0 = arith.constant 0 : i32
    %c0_i32_1 = arith.constant 0 : i32
    return %arg0, %c0_i32, %c0_i32_0 : i32, i32, i32
  }
}

</mosaic_0001>

<bundles_post_ra>
// kernel: tpu_custom_call.1
= control target key start
LH: loop header
LB: loop body
LE: loop exit
PB: predicated region body
PF: predicated region fallthrough
CT: control target
= control target key end

     0   :  { %14 = vsyncpa [#allocation3], 0  ;;  %s1628_s0 = inlined_call_operand.vmem [shape: f32[2,144,32], index: 0, kind: input, shape index: {}]   ;;  %s1629_s1 = inlined_call_operand.vmem [shape: f32[32,8], index: 1, kind: input, shape index: {}]   ;;  %s1630_s2 = inlined_call_operand.vmem [shape: f32[1,8], index: 2, kind: input, shape index: {}]   ;;  %s1631_s3 = inlined_call_operand.vmem [shape: f32[9,8,8], index: 3, kind: input, shape index: {}]   ;;  %s1632_s4 = inlined_call_operand.vmem [shape: f32[1,8], index: 4, kind: input, shape index: {}]   ;;  %s1633_s5 = inlined_call_operand.vmem [shape: f32[9,8,128], index: 5, kind: input, shape index: {}]   ;;  %s1634_s6 = inlined_call_operand.vmem [shape: f32[1,128], index: 6, kind: input, shape index: {}]   ;;  %s1635_s7 = inlined_call_operand.vmem [shape: f32[1,128], index: 7, kind: input, shape index: {}]   ;;  %s1636_s8 = inlined_call_operand.vmem [shape: f32[1,128], index: 8, kind: input, shape index: {}]   ;;  %s1637_s9 = inlined_call_operand.hbm [shape: f32[2,1,128], index: 9, kind: output, shape index: {}]  }
   0x1   :  { %16 = vsyncpa [#allocation3 + $0x1], 0  ;;  %s1377_s30 = smov 0   ;;  %s1379_s10 = smov 0  }
   0x2   :  { %s1381_s11 = smov 0   ;;  %s1383_s12 = smov 0  }
   0x3 LB: > { %s1398_s13 = sadd.s32 4294967295, %s1325_s12   ;;  %s1137_s14 = sadd.s32 4294967294, %s1325_s12   ;;  %s1325_s12 = sphi %s1383_s12, %s1643_s12   ;;  %s1321_s11 = sphi %s1381_s11, %s1642_s11   ;;  %s1317_s10 = sphi %s1379_s10, %s1641_s10   ;;  %s1313_s30 = sphi %s1377_s30, %s1640_s30  }
   0x4   : > { %s1402_s15 = sadd.s32 1, %s1325_s12   ;;  %s223_s16 = sadd.s32 1, %s1321_s11 }
   0x5   : > { %s220_s17 = ssub.s32 %s1325_s12, %s1402_s15  ;;  %p233_p0 = scmp.ne.s32.totalorder %s1321_s11, %s1317_s10 }
   0x6   : > { %p221_p1 = scmp.eq.s32.totalorder %s220_s17, 0  ;;  %p234_p2 = scmp.eq.s32.totalorder %s1398_s13, 1 }
   0x7   : > { %p239_p3 = scmp.ne.s32.totalorder %s1317_s10, %s1313_s30  ;;  %p240_p4 = scmp.eq.s32.totalorder %s1137_s14, 1 }
   0x8   : > { %s1413_s18 = scalar_select %p221_p1, %s1321_s11, %s223_s16  }
   0x9   : > { %p1415_p5 = por %p234_p2, %p233_p0  ;;  %p1419_p6 = por %p240_p4, %p239_p3 }
   0xa   : > { %p1140_p7 = scmp.ge.s32.totalorder %s1325_s12, 1  ;;  %p290_p8 = scmp.lt.s32.totalorder %s1325_s12, 3 }
   0xc   : > { %p291_p9 = pnand %p1140_p7, %p290_p8 }
   0xd   : > { %p325_p10 = scmp.lt.s32.totalorder (!%p291_p9), %s1398_s13, 1  ;;  %s323_s17 = sand.u32 (!%p291_p9), 1, %s1317_s10  }
   0xe   : > { %294 = sbr.rel (%p291_p9) target bundleno = 825 (0x339), region = 56  ;;  %s1078_s23 = scalar_lea.hbm (!%p291_p9), %s1637_s9, %s1398_s13 }
   0xf   : > { %s324_s24 = scalar_lea.vmem (!%p291_p9), [#allocation2], %s323_s17  ;;  %s1082_s26 = sshll.u32 (!%p291_p9), %s1078_s23, 4  ;;  %s1083_s26 = int_to_ptr.hbm [resolvable:$true] %s1082_s26 }
  0x10   : > { %s1080_s25 = sshll.u32 (!%p291_p9), %s324_s24, 4  ;;  %s1277_s28 = sshra.s32 (!%p291_p9), %s1083_s26, 4  ;;  %s1081_s25 = int_to_ptr.vmem [resolvable:$true] %s1080_s25  ;;  %s1278_s28 = int_to_ptr.hbm [resolvable:$true] %s1277_s28 }
  0x11   : > { %s1279_s29 = scalar_lea.hbm (!%p291_p9), %s1278_s28, 1  ;;  %p1284_p0 = scmp.lt.s32.totalorder (!%p291_p9), %s1278_s28, %s1637_s9 }
  0x12   : > { %p1280_p11 = scmp.ne.s32.totalorder (!%p291_p9), %s1278_s28, %s1279_s29 }
  0x13   : > { %v351_v0 = vld [vmem:[%s1629_s1 + $0x18] sm:$0xff]  ;;  %v350_v1 = vld [vmem:[%s1629_s1 + $0x10] sm:$0xff]  ;;  %v349_v2 = vld [vmem:[%s1629_s1 + $0x8] sm:$0xff]  ;;  %s326_s27 = scalar_select %p325_p10, %s1398_s13, 1  ;;  %vm356_vm0 = vcmask 261120   ;;  %vm503_vm1 = vcmask 64512  }
  0x14   : > { %423 = vmatpush.msra.mxu0 %v351_v0  ;;  %1205 = vmatpush.msra.mxu1 %v351_v0  ;;  %v348_v3 = vld [vmem:[%s1629_s1] sm:$0xff]  ;;  %v1160_v23 = vld [vmem:[%s1631_s3 + $0x8] sm:$0xff]  ;;  %v1165_v28 = vld [vmem:[%s1631_s3 + $0x10] sm:$0xff]  ;;  %vm1039_vm3 = vcmask 1040384   ;;  %p1281_p12 = pnand %p1280_p11, %p1415_p5  ;;  %s1283_s13 = scalar_lea.hbm %s1637_s9, 2 }
  0x15   : > { %1206 = vmatpush.msra.mxu2 %v351_v0  ;;  %1207 = vmatpush.msra.mxu3 %v351_v0  ;;  %s1217_s14 = smul.u32 144, %s326_s27  ;;  %v500_v22 = vld [vmem:[%s1631_s3] sm:$0xff]  ;;  %v1168_v35 = vld [vmem:[%s1631_s3 + $0x18] sm:$0xff]  ;;  %v1174_v43 = vld [vmem:[%s1631_s3 + $0x28] sm:$0xff]  ;;  %s1070_s27 = scalar_lea.sflag [#allocation3], %s323_s17 }
  0x16   : > { %424 = vmatpush.msra.mxu0 %v350_v1  ;;  %1208 = vmatpush.msra.mxu1 %v350_v1  ;;  %v1489_v24 = vld [vmem:[%s1630_s2] ss:$0 sm:$0xff]  ;;  %v1177_v50 = vld [vmem:[%s1631_s3 + $0x30] sm:$0xff]  ;;  %v1180_v52 = vld [vmem:[%s1631_s3 + $0x38] sm:$0xff]  ;;  %p1282_p13 = pneg %p1281_p12  ;;  %p1285_p1 = scmp.lt.s32.totalorder %s1283_s13, %s1279_s29 }
  0x17   : > { %1209 = vmatpush.msra.mxu2 %v350_v1  ;;  %1210 = vmatpush.msra.mxu3 %v350_v1  ;;  %s1442_s21 = scalar_lea.vmem %s1628_s0, %s1217_s14  ;;  %v1171_v42 = vld [vmem:[%s1631_s3 + $0x20] sm:$0xff] }
  0x18   : > { %425 = vmatpush.msra.mxu0 %v349_v2  ;;  %1211 = vmatpush.msra.mxu1 %v349_v2  ;;  %v330_v4 = vld [vmem:[%s1442_s21] sm:$0xff]  ;;  %v331_v5 = vld [vmem:[%s1442_s21 + $0x8] sm:$0xff]  ;;  %v332_v6 = vld [vmem:[%s1442_s21 + $0x10] sm:$0xff]  ;;  %p1286_p2 = por %p1285_p1, %p1284_p0 }
  0x19   : > { %1212 = vmatpush.msra.mxu2 %v349_v2  ;;  %1213 = vmatpush.msra.mxu3 %v349_v2  ;;  %v333_v7 = vld [vmem:[%s1442_s21 + $0x18] sm:$0xff]  ;;  %v334_v8 = vld [vmem:[%s1442_s21 + $0x20] sm:$0xff]  ;;  %v343_v10 = vld [vmem:[%s1442_s21 + $0x68] sm:$0xff] }
  0x1a   : > { %426 = vmatpush.msra.mxu0 %v348_v3  ;;  %1214 = vmatpush.msra.mxu1 %v348_v3  ;;  %v341_v9 = vld [vmem:[%s1442_s21 + $0x58] sm:$0xff]  ;;  %v335_v11 = vld [vmem:[%s1442_s21 + $0x28] sm:$0xff]  ;;  %v342_v12 = vld [vmem:[%s1442_s21 + $0x60] sm:$0xff]  ;;  %p1287_p3 = pnand %p1286_p2, %p1282_p13 }
  0x1b   : > { %1142 = vmatmul.msk.f32.vlgmr.msra.gmra.mxu0 %vm356_vm0, %v330_v4  ;;  %1215 = vmatpush.msra.mxu2 %v348_v3  ;;  %v344_v13 = vld [vmem:[%s1442_s21 + $0x70] sm:$0xff]  ;;  %v345_v15 = vld [vmem:[%s1442_s21 + $0x78] sm:$0xff]  ;;  %v346_v16 = vld [vmem:[%s1442_s21 + $0x80] sm:$0xff] }
  0x1c   : > { %1216 = vmatpush.msra.mxu3 %v348_v3  ;;  %1153 = vmatmul.msk.f32.vlgmr.msra.gmra.mxu1 %vm356_vm0, %v341_v9  ;;  %v336_v14 = vld [vmem:[%s1442_s21 + $0x30] sm:$0xff]  ;;  %v337_v17 = vld [vmem:[%s1442_s21 + $0x38] sm:$0xff]  ;;  %v347_v18 = vld [vmem:[%s1442_s21 + $0x88] sm:$0xff] }
  0x1d   : > { %1155 = vmatmul.msk.f32.vlgmr.msra.gmra.mxu2 %vm356_vm0, %v343_v10  ;;  %1158 = vmatmul.msk.f32.vlgmr.msra.gmra.mxu3 %vm356_vm0, %v346_v16  ;;  %v338_v19 = vld [vmem:[%s1442_s21 + $0x40] sm:$0xff]  ;;  %v339_v20 = vld [vmem:[%s1442_s21 + $0x48] sm:$0xff]  ;;  %v340_v21 = vld [vmem:[%s1442_s21 + $0x50] sm:$0xff] }
  0x1e   : > { %554 = vmatpush.msrb.mxu2 %v500_v22  ;;  %525 = vmatpush.msrb.mxu1 %v1160_v23  ;;  %v1183_v53 = vld [vmem:[%s1631_s3 + $0x40] sm:$0xff] }
  0x1f   : > { %585 = vmatpush.msrb.mxu3 %v1165_v28 }
  0x20   : > { %618 = vmatpush.msra.mxu1 %v1168_v35  ;;  %651 = vmatpush.msra.mxu2 %v1171_v42  ;;  %v1191_v35 = vld [vmem:[%s1633_s5 + $0x18] sm:$0xff] }
  0x21   : > { %684 = vmatpush.msra.mxu3 %v1174_v43 }
  0x23   : > { %1143 = vmatmul.msk.f32.gmra.mxu0 %vm356_vm0, %v331_v5 }
  0x24   : > { %1154 = vmatmul.msk.f32.gmra.mxu1 %vm356_vm0, %v342_v12 }
  0x25   : > { %1156 = vmatmul.msk.f32.gmra.mxu2 %vm356_vm0, %v344_v13  ;;  %1159 = vmatmul.msk.f32.gmra.mxu3 %vm356_vm0, %v347_v18 }
  0x2b   : > { %1144 = vmatmul.msk.f32.gmra.mxu0 %vm356_vm0, %v332_v6 }
  0x2d   : > { %1157 = vmatmul.msk.f32.gmra.mxu2 %vm356_vm0, %v345_v15 }
  0x33   : > { %1145 = vmatmul.msk.f32.gmra.mxu0 %vm356_vm0, %v333_v7 }
  0x3b   : > { %1146 = vmatmul.msk.f32.gmra.mxu0 %vm356_vm0, %v334_v8 }
  0x43   : > { %1147 = vmatmul.msk.f32.gmra.mxu0 %vm356_vm0, %v335_v11 }
  0x4b   : > { %1148 = vmatmul.msk.f32.gmra.mxu0 %vm356_vm0, %v336_v14 }
  0x53   : > { %1149 = vmatmul.msk.f32.gmra.mxu0 %vm356_vm0, %v337_v17 }
  0x5b   : > { %1150 = vmatmul.msk.f32.gmra.mxu0 %vm356_vm0, %v338_v19 }
  0x63   : > { %1151 = vmatmul.msk.f32.gmra.mxu0 %vm356_vm0, %v339_v20 }
  0x6b   : > { %1152 = vmatmul.msk.f32.gmra.mxu0 %vm356_vm0, %v340_v21 }
  0x98   : > { %v428_v25 = vpop.f32.mrf.mxu0 }
  0x99   : > { %v429_v26 = vadd.f32 %v1489_v24, %v428_v25  ;;  %v461_v48 = vpop.f32.mrf.mxu1  ;;  %v1187_v25 = vld [vmem:[%s1633_s5 + $0x8] sm:$0xff] }
  0x9a   : > { %v462_v12 = vadd.f32 %v1489_v24, %v461_v48 }
  0x9b   : > { %v482_v27 = vmax.f32 %v429_v26, 0.0  ;;  %v1189_v26 = vld [vmem:[%s1633_s5 + $0x10] sm:$0xff] }
  0x9c   : > { %v493_v15 = vmax.f32 %v462_v12, 0.0 }
  0x9d   : > { %1163 = vmatmul.msk.f32.vlgmr.msrb.gmra.mxu2 %vm503_vm1, %v482_v27  ;;  %v802_v27 = vld [vmem:[%s1633_s5] sm:$0xff] }
  0x9e   : > { %750 = vmatpush.msrb.mxu2 %v1180_v52 }
  0xa0   : > { %v431_v29 = vpop.f32.mrf.mxu0  ;;  %v467_v59 = vpop.f32.mrf.mxu2 }
  0xa1   : > { %v432_v30 = vadd.f32 %v1489_v24, %v431_v29  ;;  %v464_v56 = vpop.f32.mrf.mxu1  ;;  %v468_v0 = vadd.f32 %v1489_v24, %v467_v59  ;;  %v476_v14 = vpop.f32.mrf.mxu3  ;;  %v1197_v59 = vld [vmem:[%s1633_s5 + $0x30] sm:$0xff] }
  0xa2   : > { %v465_v58 = vadd.f32 %v1489_v24, %v464_v56  ;;  %v477_v17 = vadd.f32 %v1489_v24, %v476_v14  ;;  %v801_v14 = vld [vmem:[%s1634_s6] sm:$0x1] }
  0xa3   : > { %v483_v31 = vmax.f32 %v432_v30, 0.0  ;;  %v495_v4 = vmax.f32 %v468_v0, 0.0 }
  0xa4   : > { %v494_v62 = vmax.f32 %v465_v58, 0.0  ;;  %v498_v18 = vmax.f32 %v477_v17, 0.0 }
  0xa5   : > { %1164 = vmatmul.msk.f32.gmra.mxu2 %vm503_vm1, %v483_v31 }
  0xa8   : > { %v434_v32 = vpop.f32.mrf.mxu0  ;;  %v470_v2 = vpop.f32.mrf.mxu2 }
  0xa9   : > { %v435_v33 = vadd.f32 %v1489_v24, %v434_v32  ;;  %v471_v6 = vadd.f32 %v1489_v24, %v470_v2  ;;  %v479_v19 = vpop.f32.mrf.mxu3 }
  0xaa   : > { %v480_v20 = vadd.f32 %v1489_v24, %v479_v19 }
  0xab   : > { %v484_v34 = vmax.f32 %v435_v33, 0.0  ;;  %v496_v9 = vmax.f32 %v471_v6, 0.0  ;;  %v1193_v33 = vld [vmem:[%s1633_s5 + $0x20] sm:$0xff] }
  0xac   : > { %v499_v21 = vmax.f32 %v480_v20, 0.0 }
  0xad   : > { %1161 = vmatmul.msk.f32.vlgmr.msrb.gmra.mxu1 %vm503_vm1, %v484_v34  ;;  %v1195_v34 = vld [vmem:[%s1633_s5 + $0x28] sm:$0xff] }
  0xae   : > { %717 = vmatpush.msrb.mxu1 %v1177_v50 }
  0xb0   : > { %v437_v36 = vpop.f32.mrf.mxu0  ;;  %v473_v10 = vpop.f32.mrf.mxu2 }
  0xb1   : > { %v438_v37 = vadd.f32 %v1489_v24, %v437_v36  ;;  %v474_v13 = vadd.f32 %v1489_v24, %v473_v10 }
  0xb3   : > { %v485_v38 = vmax.f32 %v438_v37, 0.0  ;;  %v497_v16 = vmax.f32 %v474_v13, 0.0 }
  0xb5   : > { %1162 = vmatmul.msk.f32.gmra.mxu1 %vm503_vm1, %v485_v38 }
  0xb8   : > { %v440_v39 = vpop.f32.mrf.mxu0 }
  0xb9   : > { %v441_v40 = vadd.f32 %v1489_v24, %v440_v39 }
  0xbb   : > { %v486_v41 = vmax.f32 %v441_v40, 0.0 }
  0xbd   : > { %1166 = vmatmul.msk.f32.vlgmr.msrb.gmra.mxu3 %vm503_vm1, %v486_v41 }
  0xbe   : > { %783 = vmatpush.msrb.mxu3 %v1183_v53 }
  0xc0   : > { %v443_v44 = vpop.f32.mrf.mxu0 }
  0xc1   : > { %v444_v45 = vadd.f32 %v1489_v24, %v443_v44 }
  0xc3   : > { %v487_v46 = vmax.f32 %v444_v45, 0.0 }
  0xc5   : > { %1167 = vmatmul.msk.f32.gmra.mxu3 %vm503_vm1, %v487_v46 }
  0xc8   : > { %v446_v47 = vpop.f32.mrf.mxu0 }
  0xc9   : > { %v447_v49 = vadd.f32 %v1489_v24, %v446_v47 }
  0xcb   : > { %v488_v51 = vmax.f32 %v447_v49, 0.0 }
  0xcd   : > { %1169 = vmatmul.msk.f32.vlgmr.msra.gmra.mxu1 %vm503_vm1, %v488_v51  ;;  %v1258_v51 = vld [vmem:[%s1632_s4] ss:$0 sm:$0xff] }
  0xce   : > { %821 = vmatpush.msra.mxu1 %v802_v27 }
  0xd0   : > { %v449_v54 = vpop.f32.mrf.mxu0 }
  0xd1   : > { %v450_v55 = vadd.f32 %v1489_v24, %v449_v54 }
  0xd3   : > { %v489_v57 = vmax.f32 %v450_v55, 0.0 }
  0xd5   : > { %1170 = vmatmul.msk.f32.gmra.mxu1 %vm503_vm1, %v489_v57 }
  0xd8   : > { %v452_v60 = vpop.f32.mrf.mxu0 }
  0xd9   : > { %v453_v61 = vadd.f32 %v1489_v24, %v452_v60 }
  0xdb   : > { %v490_v63 = vmax.f32 %v453_v61, 0.0 }
  0xdd   : > { %1172 = vmatmul.msk.f32.vlgmr.msra.gmra.mxu2 %vm503_vm1, %v490_v63  ;;  %1178 = vmatmul.msk.f32.vlgmr.msrb.gmra.mxu1 %vm503_vm1, %v494_v62  ;;  %v1199_v62 = vld [vmem:[%s1633_s5 + $0x38] sm:$0xff]  ;;  %v1201_v63 = vld [vmem:[%s1633_s5 + $0x40] sm:$0xff] }
  0xde   : > { %847 = vmatpush.msra.mxu2 %v1187_v25  ;;  %899 = vmatpush.msrb.mxu1 %v1191_v35 }
  0xe0   : > { %v455_v1 = vpop.f32.mrf.mxu0 }
  0xe1   : > { %v456_v3 = vadd.f32 %v1489_v24, %v455_v1 }
  0xe3   : > { %v491_v5 = vmax.f32 %v456_v3, 0.0 }
  0xe5   : > { %1173 = vmatmul.msk.f32.gmra.mxu2 %vm503_vm1, %v491_v5  ;;  %1179 = vmatmul.msk.f32.gmra.mxu1 %vm503_vm1, %v495_v4 }
  0xe8   : > { %v458_v7 = vpop.f32.mrf.mxu0 }
  0xe9   : > { %v459_v8 = vadd.f32 %v1489_v24, %v458_v7 }
  0xeb   : > { %v492_v11 = vmax.f32 %v459_v8, 0.0 }
  0xed   : > { %1175 = vmatmul.msk.f32.vlgmr.msra.gmra.mxu3 %vm503_vm1, %v492_v11  ;;  %1181 = vmatmul.msk.f32.vlgmr.msrb.gmra.mxu2 %vm503_vm1, %v496_v9 }
  0xee   : > { %873 = vmatpush.msra.mxu3 %v1189_v26  ;;  %925 = vmatpush.msrb.mxu2 %v1193_v33  ;;  %v1035_v26 = vlaneseq }
  0xf5   : > { %1176 = vmatmul.msk.f32.gmra.mxu3 %vm503_vm1, %v493_v15  ;;  %1182 = vmatmul.msk.f32.gmra.mxu2 %vm503_vm1, %v497_v16 }
  0xfd   : > { %1184 = vmatmul.msk.f32.vlgmr.msrb.gmra.mxu3 %vm503_vm1, %v498_v18 }
  0xfe   : > { %951 = vmatpush.msrb.mxu3 %v1195_v34 }
 0x105   : > { %1185 = vmatmul.msk.f32.gmra.mxu3 %vm503_vm1, %v499_v21 }
 0x120   : > { %v556_v23 = vpop.f32.mrf.mxu2 }
 0x128   : > { %v559_v29 = vpop.f32.mrf.mxu2 }
 0x12a   : > { %v527_v22 = vpop.f32.mrf.mxu1 }
 0x12b   : > { %v557_v36 = vadd.f32 %v556_v23, %v527_v22 }
 0x132   : > { %v530_v28 = vpop.f32.mrf.mxu1 }
 0x133   : > { %v560_v48 = vadd.f32 %v559_v29, %v530_v28  ;;  %v1036_v28 = vand.u32 127, %v1035_v26 }
 0x135   : > { %vm1037_vm2 = vcmp.lt.s32.totalorder %v1036_v28, 32 }
 0x140   : > { %v587_v24 = vpop.f32.mrf.mxu3 }
 0x141   : > { %v593_v38 = vadd.f32 %v587_v24, %v557_v36 }
 0x148   : > { %v590_v30 = vpop.f32.mrf.mxu3 }
 0x149   : > { %v594_v49 = vadd.f32 %v590_v30, %v560_v48 }
 0x14a   : > { %v620_v31 = vpop.f32.mrf.mxu1 }
 0x14b   : > { %v626_v40 = vadd.f32 %v620_v31, %v593_v38 }
 0x152   : > { %v623_v39 = vpop.f32.mrf.mxu1 }
 0x153   : > { %v627_v53 = vadd.f32 %v623_v39, %v594_v49 }
 0x15a   : > { %v719_v45 = vpop.f32.mrf.mxu1 }
 0x160   : > { %v653_v32 = vpop.f32.mrf.mxu2 }
 0x161   : > { %v659_v42 = vadd.f32 %v653_v32, %v626_v40 }
 0x162   : > { %v722_v0 = vpop.f32.mrf.mxu1 }
 0x168   : > { %v656_v41 = vpop.f32.mrf.mxu2 }
 0x169   : > { %v660_v55 = vadd.f32 %v656_v41, %v627_v53 }
 0x170   : > { %v686_v37 = vpop.f32.mrf.mxu3  ;;  %v752_v47 = vpop.f32.mrf.mxu2 }
 0x171   : > { %v692_v43 = vadd.f32 %v686_v37, %v659_v42 }
 0x173   : > { %v725_v46 = vadd.f32 %v719_v45, %v692_v43 }
 0x175   : > { %v758_v50 = vadd.f32 %v752_v47, %v725_v46 }
 0x178   : > { %v689_v44 = vpop.f32.mrf.mxu3  ;;  %v755_v2 = vpop.f32.mrf.mxu2 }
 0x179   : > { %v693_v57 = vadd.f32 %v689_v44, %v660_v55 }
 0x17b   : > { %v726_v1 = vadd.f32 %v722_v0, %v693_v57 }
 0x17d   : > { %v759_v4 = vadd.f32 %v755_v2, %v726_v1 }
 0x180   : > { %v785_v52 = vpop.f32.mrf.mxu3 }
 0x181   : > { %v791_v54 = vadd.f32 %v785_v52, %v758_v50 }
 0x183   : > { %v797_v56 = vadd.f32 %v1258_v51, %v791_v54  ;;  %v1065_v54 = vld [vmem:[%s1636_s8] sm:$0x1] }
 0x185   : > { %v799_v58 = vmax.f32 %v797_v56, 0.0 }
 0x187   : > { %1186 = vmatmul.msk.f32.vlgmr.msra.gmra.mxu1 %vm503_vm1, %v799_v58  ;;  %v829_v60 = vrot.slane %v799_v58, 1  ;;  %v855_v61 = vrot.slane %v799_v58, 2  ;;  %v881_v5 = vrot.slane %v799_v58, 3  ;;  %v907_v7 = vrot.slane %v799_v58, 4 }
 0x188   : > { %977 = vmatpush.msra.mxu1 %v1197_v59  ;;  %v788_v3 = vpop.f32.mrf.mxu3  ;;  %v933_v8 = vrot.slane %v799_v58, 5  ;;  %v959_v10 = vrot.slane %v799_v58, 6  ;;  %v985_v12 = vrot.slane %v799_v58, 7 }
 0x189   : > { %1188 = vmatmul.msk.f32.vlgmr.msra.gmra.mxu2 %vm503_vm1, %v829_v60  ;;  %1190 = vmatmul.msk.f32.vlgmr.msra.gmra.mxu3 %vm503_vm1, %v855_v61  ;;  %v792_v6 = vadd.f32 %v788_v3, %v759_v4 }
 0x18a   : > { %1003 = vmatpush.msra.mxu2 %v1199_v62  ;;  %1029 = vmatpush.msra.mxu3 %v1201_v63 }
 0x18b   : > { %v798_v9 = vadd.f32 %v1258_v51, %v792_v6  ;;  %v1063_v51 = vld [vmem:[%s1635_s7] sm:$0x1] }
 0x18d   : > { %v800_v11 = vmax.f32 %v798_v9, 0.0 }
 0x18f   : > { %1192 = vmatmul.msk.f32.vlgmr.msrb.gmra.mxu1 %vm503_vm1, %v881_v5 }
 0x191   : > { %1194 = vmatmul.msk.f32.vlgmr.msrb.gmra.mxu2 %vm503_vm1, %v907_v7  ;;  %1196 = vmatmul.msk.f32.vlgmr.msrb.gmra.mxu3 %vm503_vm1, %v933_v8 }
 0x197   : > { %1198 = vmatmul.msk.f32.vlgmr.msra.gmra.mxu1 %vm503_vm1, %v959_v10 }
 0x199   : > { %1200 = vmatmul.msk.f32.vlgmr.msra.gmra.mxu2 %vm503_vm1, %v985_v12  ;;  %1202 = vmatmul.msk.f32.vlgmr.msra.gmra.mxu3 %vm503_vm1, %v800_v11 }
 0x204   : > { %v823_v13 = vpop.f32.mrf.mxu1 }
 0x205   : > { %v826_v15 = vadd.f32 %v823_v13, %v801_v14 }
 0x20c   : > { %v849_v16 = vpop.f32.mrf.mxu2  ;;  %v875_v17 = vpop.f32.mrf.mxu3 }
 0x20d   : > { %v852_v18 = vadd.f32 %v849_v16, %v826_v15  ;;  %v901_v20 = vpop.f32.mrf.mxu1 }
 0x20f   : > { %v878_v19 = vadd.f32 %v875_v17, %v852_v18 }
 0x211   : > { %v904_v21 = vadd.f32 %v901_v20, %v878_v19 }
 0x214   : > { %v927_v22 = vpop.f32.mrf.mxu2  ;;  %v953_v23 = vpop.f32.mrf.mxu3 }
 0x215   : > { %v930_v25 = vadd.f32 %v927_v22, %v904_v21  ;;  %v979_v24 = vpop.f32.mrf.mxu1 }
 0x217   : > { %v956_v27 = vadd.f32 %v953_v23, %v930_v25 }
 0x219   : > { %v982_v29 = vadd.f32 %v979_v24, %v956_v27 }
 0x21c   : > { %v1005_v30 = vpop.f32.mrf.mxu2  ;;  %v1031_v32 = vpop.f32.mrf.mxu3 }
 0x21d   : > { %v1008_v31 = vadd.f32 %v1005_v30, %v982_v29 }
 0x21f   : > { %v1034_v33 = vadd.f32 %v1031_v32, %v1008_v31 }
 0x221   : > { %v1038_v34 = vsel %vm1037_vm2, %v1034_v33, 0.0 }
 0x222   : > { %v1040_v35 = vsel %vm1039_vm3, %v1038_v34, 0.0 }
 0x223   : > { %1041 = vadd.xlane.f32.xlu0 %v1040_v35 }
 0x296   : > { %v1042_v36 = vpop.xlane.xlu0 %1041 }
 0x297   : > { %v1043_v37 = vmul.f32 0.03125, %v1042_v36 }
 0x299   : > { %v1044_v38 = vsub.f32 %v1034_v33, %v1043_v37 }
 0x29b   : > { %v1045_v39 = vmul.f32 %v1044_v38, %v1044_v38 }
 0x29d   : > { %v1046_v40 = vsel %vm1037_vm2, %v1045_v39, 0.0 }
 0x29e   : > { %v1047_v41 = vsel %vm1039_vm3, %v1046_v40, 0.0 }
 0x29f   : > { %1048 = vadd.xlane.f32.xlu0 %v1047_v41 }
 0x312   : > { %v1049_v42 = vpop.xlane.xlu0 %1048 }
 0x313   : > { %v1050_v43 = vmul.f32 0.03125, %v1049_v42 }
 0x315   : > { %v1051_v44 = vadd.f32 1e-05, %v1050_v43 }
 0x317   : > { %1259 = vrsqrt.f32 %v1051_v44  ;;  %vm1058_vm5 = vweird.f32 %v1051_v44 }
 0x31d   : > { %v1260_v45 = vpop.eup %1259 }
 0x31e   : > { %v1053_v46 = vmul.f32 %v1260_v45, %v1051_v44  ;;  %vm1059_vm4 = vweird.f32 %v1260_v45 }
 0x31f   : > { %vm1060_vm6 = vmor %vm1058_vm5, %vm1059_vm4 }
 0x320   : > { %v1054_v47 = vmul.f32 %v1260_v45, %v1053_v46 }
 0x322   : > { %v1055_v48 = vmul.f32 0.5, %v1054_v47 }
 0x324   : > { %v1056_v49 = vsub.f32 1.5, %v1055_v48 }
 0x326   : > { %v1057_v50 = vmul.f32 %v1260_v45, %v1056_v49 }
 0x328   : > { %v1061_v52 = vsel %vm1060_vm6, %v1260_v45, %v1057_v50 }
 0x329   : > { %v1062_v53 = vmul.f32 %v1061_v52, %v1044_v38 }
 0x32b   : > { %v1064_v55 = vmul.f32 %v1063_v51, %v1062_v53 }
 0x32d   : > { %v1066_v56 = vadd.f32 %v1065_v54, %v1064_v55 }
 0x32f   : > { %1261 = vtanh.f32 %v1066_v56 }
 0x335   : > { %v1262_v57 = vpop.eup %1261 }
 0x336   : > { %1068 = vst [vmem:[%s324_s24] sm:$0x1] %v1262_v57 }
 0x337   : > { %1290 = shalt.err (!%p1287_p3)
}
 0x338   : > { %1218 = dma.vmem_to_hbm [thread:$0]  (%p1415_p5), %s1081_s25, 16, %s1083_s26, %s1070_s27  }
 0x339 PF: > { %p1224_p4 = scmp.ge.s32.totalorder %s1325_s12, 2  ;;  %s1094_s17 = sand.u32 1, %s1313_s30  }
 0x33a   : > { %s1095_s23 = scalar_lea.sflag [#allocation3], %s1094_s17 }
 0x33b   : > { %p1221_p7 = pnand %p1224_p4, %p1419_p6 }
 0x33d   : > { %p1222_p8 = pneg %p1221_p7 }
 0x33f   : > { %1308 = dma.done.wait (%p1222_p8), %s1095_s23, 16  }
 0x340   : > { %1310 = vsyncadd (%p1222_p8), %s1095_s23, 4294967280  ;;  %p19_p9 = scmp.ge.s32.totalorder %s1402_s15, 4   ;;  %s1640_s30 = smov %s1317_s10 }
 0x341   : > { %s1641_s10 = smov %s1321_s11  ;;  %s1642_s11 = smov %s1413_s18 }
 0x342   : > { %s1643_s12 = smov %s1402_s15  ;;  %21 = sbr.rel (!%p19_p9) target bundleno = 3 (0x3), region = 107 }
 0x347   :  { %1100 = vsyncpa [#allocation3], 1 }
 0x348   :  { %1102 = vsyncpa [#allocation3 + $0x1], 1 }

</bundles_post_ra>
